<compile_context>
chip_gen: v6e
topology: v6e:2x2x1
jax: 0.10.0
libtpu: 0.0.40
codegen_flags: <defaults>
</compile_context>

<pallas_src>
import jax
import jax.numpy as jnp
from jax.experimental import pallas as pl
from jax.experimental.pallas import tpu as pltpu


def _round_up(x: int, m: int) -> int:
    return ((x + m - 1) // m) * m


# ----------------------------- matmul kernel (hot path) -----------------------------

def _make_pca_kernel(*, K: int, tk: int, N: int, num_k: int, v_resident: bool):
    needs_mask = (K % tk) != 0  # only the last reduction tile is partial

    def kernel(x_ref, v_ref, o_ref, acc_ref):
        k = pl.program_id(1)

        @pl.when(k == 0)
        def _init():
            acc_ref[...] = jnp.zeros_like(acc_ref)

        x = x_ref[...]
        if needs_mask:
            # Zero the out-of-range K columns of the (unpadded-in-HBM) X tile so the
            # partial tail tile contributes nothing (and stale OOB data never enters
            # the MXU).  Cheap VPU work, hidden under the HBM-bound DMA.
            col = jax.lax.broadcasted_iota(jnp.int32, x.shape, 1)
            limit = K - k * tk
            x = jnp.where(col < limit, x, jnp.zeros_like(x))

        if v_resident and num_k > 1:
            start = pl.multiple_of(k * tk, 8)
            v = v_ref[pl.ds(start, tk), :]
        else:
            v = v_ref[...]

        acc_ref[...] += jnp.dot(x, v, preferred_element_type=jnp.float32)

        @pl.when(k == pl.num_programs(1) - 1)
        def _store():
            # Output is stored at its true width N (lane-masked store) -- less HBM
            # write traffic than a 128-wide padded slab + wrapper slice.
            o_ref[...] = acc_ref[:, :N].astype(o_ref.dtype)

    return kernel


def pca_transform(X, V, *, tm=None, tk=None):
    """Compute X @ V with a Pallas MXU kernel tiled over batch (parallel) and K (arbitrary)."""
    M, K = X.shape
    Kv, N = V.shape
    assert K == Kv, "n_features mismatch"

    out_dtype = X.dtype
    dsz = jnp.dtype(X.dtype).itemsize

    # VMEM budget derived from the actual chip (~70% of capacity):
    # ~45 MiB on v7x (64 MiB/TC), ~90 MiB on v5e/v6e (128 MiB).
    try:
        vmem_cap = int(pltpu.get_tpu_info().vmem_capacity_bytes)
    except Exception:
        vmem_cap = 64 * 1024 * 1024  # conservative fallback (v7x per-TC)
    budget = int(vmem_cap * 0.7)

    # Lane-pad the component axis of V to a full 128-lane vreg (V is tiny -> cheap).
    n_pad = _round_up(max(N, 1), 128)

    # K (reduction) tiling. X itself is never padded in HBM; only tiny V is padded.
    if tk is None:
        tk = K if K <= 4096 else 2048
    tk = max(1, min(tk, K))
    k_pad = _round_up(K, tk)
    num_k = k_pad // tk

    # Pad V (cheap: k_pad x 128 elements) along both axes; zero K-tail rows so the
    # padded rows contribute nothing.
    V = V.astype(X.dtype)
    if (k_pad != K) or (n_pad != N):
        V = jnp.pad(V, ((0, k_pad - K), (0, n_pad - N)))

    # Keep V fully resident in VMEM when it comfortably fits (assume it may be
    # double-buffered); otherwise tile it over K like X.
    v_resident = (2 * k_pad * n_pad * dsz) <= budget // 4

    # Row tile: large tiles amortize per-grid-step overhead, but keep >= 2 row tiles
    # whenever possible so the "parallel" axis can shard across v7x's 2 TensorCores.
    if tm is None:
        tm = min(512, max(8, _round_up(-(-M // 2), 8)))
    tm = max(8, _round_up(tm, 8))

    def working_set(tm_):
        v_bytes = 2 * (k_pad if v_resident else tk) * n_pad * dsz
        return (2 * tm_ * tk * dsz        # X tile, double-buffered
                + v_bytes                 # V (resident or tiled)
                + tm_ * n_pad * 4         # f32 accumulator scratch
                + 2 * tm_ * N * dsz)      # output tile, double-buffered

    while tm > 8 and working_set(tm) > budget:
        tm = max(8, tm // 2)

    grid = (pl.cdiv(M, tm), num_k)

    x_spec = pl.BlockSpec((tm, tk), lambda i, k: (i, k))
    if v_resident:
        # Constant block index -> fetched into VMEM exactly once.
        v_spec = pl.BlockSpec((k_pad, n_pad), lambda i, k: (0, 0))
    else:
        v_spec = pl.BlockSpec((tk, n_pad), lambda i, k: (k, 0))
    out_spec = pl.BlockSpec((tm, N), lambda i, k: (i, 0))

    kernel = _make_pca_kernel(K=K, tk=tk, N=N, num_k=num_k, v_resident=v_resident)

    # TODO(synk): optionally stream X as bf16 on v6e/v7x (f32 accumulation kept) for
    # ~2x HBM savings if PCA projection accuracy allows; default preserves X.dtype.
    return pl.pallas_call(
        kernel,
        out_shape=jax.ShapeDtypeStruct((M, N), out_dtype),
        grid_spec=pltpu.PrefetchScalarGridSpec(
            num_scalar_prefetch=0,
            grid=grid,
            in_specs=[x_spec, v_spec],
            out_specs=out_spec,
            scratch_shapes=[pltpu.VMEM((tm, n_pad), jnp.float32)],
        ),
        compiler_params=pltpu.CompilerParams(
            dimension_semantics=("parallel", "arbitrary"),
            vmem_limit_bytes=budget,
        ),
    )(X, V)


# ------------------------------------ module wrapper ---------------------------------

class PCA:
    """JAX/Pallas port of crank_ml PCA (polyak-averaged PCA)."""

    def __init__(self, n_features: int, n_components: int = 6, polyak_weight: float = 0.1):
        self.n_features = n_features
        self.n_components = n_components
        self.polyak_weight = polyak_weight
        # deterministic init, same as torch: zeros((n_features, n_components))
        self.V = jnp.zeros((n_features, n_components), dtype=jnp.float32)
        self.training = False

    def __call__(self, X):
        if self.training:
            # TODO(synk): torch.pca_lowrank is a randomized SVD; no Pallas SVD primitive
            # exists, so the top right singular vectors come from plain-JAX SVD (glue).
            _, _, Vt = jnp.linalg.svd(X.astype(jnp.float32), full_matrices=False)
            V_new = Vt[: self.n_components, :].T
            w = jnp.float32(self.polyak_weight)
            blended = (1.0 - w) * self.V + w * V_new
            # Matches reference: |sum(V)| == 0 (uninitialized) -> take V_new, else blend.
            self.V = jnp.where(jnp.abs(jnp.sum(self.V)) == 0.0, V_new, blended)
        return pca_transform(X, self.V)


# ---------------------------------------- main ---------------------------------------

if __name__ == "__main__":
    key = jax.random.PRNGKey(0)
    batch, n_features, n_components = 64, 32, 6

    X = jax.random.normal(key, (batch, n_features), dtype=jnp.float32)

    model = PCA(n_features=n_features, n_components=n_components, polyak_weight=0.1)

    # One training step populates V (V starts at zeros -> takes fresh singular vectors).
    model.training = True
    _ = model(X)
    model.training = False

    # Eval forward: X @ V via the Pallas matmul kernel.
    out = model(X)
    out = jax.block_until_ready(out)

    # Sanity check against plain JAX reference.
    ref = X @ model.V
    assert out.shape == (batch, n_components)
    assert jnp.allclose(out, ref, atol=1e-4, rtol=1e-4), float(jnp.max(jnp.abs(out - ref)))

    print("KERNEL_OK")
</pallas_src>

<mosaic_0001>
module attributes {stable_mosaic.version = 11 : i64} {
  func.func @kernel(%arg0: i32, %arg1: i32, %arg2: memref<32x32xf32, #tpu.memory_space<vmem>>, %arg3: memref<32x128xf32, #tpu.memory_space<vmem>>, %arg4: memref<32x6xf32, #tpu.memory_space<vmem>>, %arg5: memref<32x128xf32, #tpu.memory_space<vmem>>) attributes {dimension_semantics = [#tpu.dimension_semantics<parallel>, #tpu.dimension_semantics<arbitrary>], iteration_bounds = array<i64: 2, 1>, scalar_prefetch = 0 : i64, scratch_operands = 1 : i64, tpu.core_type = #tpu.core_type<tc>, window_params = [{transform_indices = @transform_0, window_bounds = array<i64: 32, 32>}, {pipeline_mode = #tpu.pipeline_mode<synchronous>, transform_indices = @transform_1, window_bounds = array<i64: 32, 128>}, {transform_indices = @transform_2, window_bounds = array<i64: 32, 6>}]} {
    %c0_i32 = arith.constant 0 : i32
    %0 = arith.cmpi eq, %arg1, %c0_i32 : i32
    %1 = arith.extui %0 : i1 to i32
    %c0_i32_0 = arith.constant 0 : i32
    %2 = arith.cmpi ne, %1, %c0_i32_0 : i32
    scf.if %2 {
      %cst_10 = arith.constant 0.000000e+00 : f32
      %12 = vector.broadcast %cst_10 : f32 to vector<32x128xf32>
      %c0_11 = arith.constant 0 : index
      %c0_12 = arith.constant 0 : index
      %13 = vector.load %arg5[%c0_11, %c0_12] : memref<32x128xf32, #tpu.memory_space<vmem>>, vector<32x128xf32>
      tpu.vector_store %arg5[%c0_11, %c0_12], %12 {strides = array<i32>} : memref<32x128xf32, #tpu.memory_space<vmem>>, vector<32x128xf32>,
    } else {
    }
    %c0 = arith.constant 0 : index
    %c0_1 = arith.constant 0 : index
    %3 = vector.load %arg2[%c0, %c0_1] : memref<32x32xf32, #tpu.memory_space<vmem>>, vector<32x32xf32>
    %c0_2 = arith.constant 0 : index
    %c0_3 = arith.constant 0 : index
    %4 = vector.load %arg3[%c0_2, %c0_3] : memref<32x128xf32, #tpu.memory_space<vmem>>, vector<32x128xf32>
    %c0_4 = arith.constant 0 : index
    %c0_5 = arith.constant 0 : index
    %5 = vector.load %arg5[%c0_4, %c0_5] : memref<32x128xf32, #tpu.memory_space<vmem>>, vector<32x128xf32>
    %cst = arith.constant dense<0.000000e+00> : vector<32x128xf32>
    %6 = tpu.matmul %3, %4, %cst {dimension_numbers = #tpu.dot_dimension_numbers<[1], [0], [0], [1], [0, 0, 1, 1], [], []>} : vector<32x32xf32>, vector<32x128xf32>, vector<32x128xf32> -> vector<32x128xf32>
    %7 = arith.addf %5, %6 : vector<32x128xf32>
    %c0_6 = arith.constant 0 : index
    %c0_7 = arith.constant 0 : index
    %8 = vector.load %arg5[%c0_6, %c0_7] : memref<32x128xf32, #tpu.memory_space<vmem>>, vector<32x128xf32>
    tpu.vector_store %arg5[%c0_6, %c0_7], %7 {strides = array<i32>} : memref<32x128xf32, #tpu.memory_space<vmem>>, vector<32x128xf32>,
    %c0_i32_8 = arith.constant 0 : i32
    %9 = arith.cmpi eq, %arg1, %c0_i32_8 : i32
    %10 = arith.extui %9 : i1 to i32
    %c0_i32_9 = arith.constant 0 : i32
    %11 = arith.cmpi ne, %10, %c0_i32_9 : i32
    scf.if %11 {
      %c0_10 = arith.constant 0 : index
      %c0_11 = arith.constant 0 : index
      %12 = vector.load %arg5[%c0_10, %c0_11] : memref<32x128xf32, #tpu.memory_space<vmem>>, vector<32x6xf32>
      %c0_12 = arith.constant 0 : index
      %c0_13 = arith.constant 0 : index
      %13 = vector.load %arg4[%c0_12, %c0_13] : memref<32x6xf32, #tpu.memory_space<vmem>>, vector<32x6xf32>
      tpu.vector_store %arg4[%c0_12, %c0_13], %12 {strides = array<i32>} : memref<32x6xf32, #tpu.memory_space<vmem>>, vector<32x6xf32>,
    } else {
    }
    return
  }
  func.func @transform_0(%arg0: i32, %arg1: i32) -> (i32, i32) {
    %c0_i32 = arith.constant 0 : i32
    return %arg0, %arg1 : i32, i32
  }
  func.func @transform_1(%arg0: i32, %arg1: i32) -> (i32, i32) {
    %c0_i32 = arith.constant 0 : i32
    %c0_i32_0 = arith.constant 0 : i32
    %c0_i32_1 = arith.constant 0 : i32
    return %c0_i32, %c0_i32_0 : i32, i32
  }
  func.func @transform_2(%arg0: i32, %arg1: i32) -> (i32, i32) {
    %c0_i32 = arith.constant 0 : i32
    %c0_i32_0 = arith.constant 0 : i32
    return %arg0, %c0_i32 : i32, i32
  }
}

</mosaic_0001>

<bundles_post_ra>
// kernel: tpu_custom_call.1
= control target key start
LH: loop header
LB: loop body
LE: loop exit
PB: predicated region body
PF: predicated region fallthrough
CT: control target
= control target key end

     0   :  { %s484_s9 = smov 0   ;;  %s486_s10 = smov 0   ;;  %s529_s0 = inlined_call_operand.vmem [shape: f32[64,32], index: 0, kind: input, shape index: {}]   ;;  %s530_s1 = inlined_call_operand.vmem [shape: f32[32,128], index: 1, kind: input, shape index: {}]   ;;  %s531_s2 = inlined_call_operand.vmem [shape: f32[64,6], index: 2, kind: output, shape index: {}]  }
   0x1   :  { %s488_s11 = smov 0  }
   0x2 LB: > { %s24_s12 = sadd.s32 1, %s463_s10  ;;  %p380_p0 = scmp.ge.s32.totalorder %s467_s11, 1  ;;  %s467_s11 = sphi %s488_s11, %s12_s11   ;;  %s463_s10 = sphi %s486_s10, %s533_s10   ;;  %s459_s9 = sphi %s484_s9, %s532_s9  }
   0x3   : > { %p26_p1 = scmp.ge.s32.totalorder %s24_s12, 2  ;;  %p130_p2 = scmp.lt.s32.totalorder %s467_s11, 3 }
   0x5   : > { %s535_s12 = smov (%p26_p1, %s24_s12), 0  ;;  %p131_p3 = pnand %p380_p0, %p130_p2 }
   0x6   : > { %s381_s17 = sshll.u32 (!%p131_p3), %s459_s9, 2 }
   0x7   : > { %134 = sbr.rel (%p131_p3) target bundleno = 218 (0xda), region = 28  ;;  %p156_p4 = scmp.lt.s32.totalorder (!%p131_p3), %s381_s17, 7 }
   0xc   : > { %v185_v0 = vld [vmem:[%s530_s1 + $0x18] sm:$0xff]  ;;  %v184_v1 = vld [vmem:[%s530_s1 + $0x10] sm:$0xff]  ;;  %v183_v2 = vld [vmem:[%s530_s1 + $0x8] sm:$0xff]  ;;  %s537_s17 = smov (!%p156_p4, %s381_s17), 7  ;;  %vm190_vm0 = vcmask 261120   ;;  %vm303_vm1 = vcmask 48128  }
   0xd   : > { %399 = vmatprep.subr.mxu0 %v185_v0  ;;  %413 = vmatprep.subr.mxu1 %v185_v0  ;;  %v182_v3 = vld [vmem:[%s530_s1] sm:$0xff]  ;;  %s382_s22 = sshll.u32 %s537_s17, 3 }
   0xe   : > { %400 = vmatpush3.msra.mxu0 %v185_v0  ;;  %417 = vmatpush3.msra.mxu1 %v185_v0  ;;  %s162_s25 = scalar_lea.vmem %s529_s0, %s382_s22  ;;  %s168_s28 = scalar_lea.vmem %s531_s2, %s382_s22 }
   0xf   : > { %401 = vmatprep.subr.mxu0 %v184_v1  ;;  %414 = vmatprep.subr.mxu1 %v184_v1  ;;  %v178_v4 = vld [vmem:[%s162_s25] sm:$0xff]  ;;  %v180_v5 = vld [vmem:[%s162_s25 + $0x10] sm:$0xff]  ;;  %v179_v6 = vld [vmem:[%s162_s25 + $0x8] sm:$0xff] }
  0x10   : > { %402 = vmatpush3.msra.mxu0 %v184_v1  ;;  %418 = vmatpush3.msra.mxu1 %v184_v1  ;;  %v181_v7 = vld [vmem:[%s162_s25 + $0x18] sm:$0xff] }
  0x11   : > { %403 = vmatprep.subr.mxu0 %v183_v2  ;;  %415 = vmatprep.subr.mxu1 %v183_v2 }
  0x12   : > { %404 = vmatpush3.msra.mxu0 %v183_v2  ;;  %419 = vmatpush3.msra.mxu1 %v183_v2 }
  0x13   : > { %405 = vmatprep.subr.mxu0 %v182_v3  ;;  %416 = vmatprep.subr.mxu1 %v182_v3 }
  0x14   : > { %406 = vmatpush3.msra.mxu0 %v182_v3  ;;  %420 = vmatpush3.msra.mxu1 %v182_v3 }
  0x15   : > { %407 = vmatprep.mubr.msk.f32.mxu0 %vm190_vm0, %v178_v4  ;;  %410 = vmatprep.mubr.msk.f32.mxu1 %vm190_vm0, %v180_v5 }
  0x16   : > { %408 = vmatmul.mubr.msk.f32.vlgmr.msra.gmra.mxu0 %vm190_vm0, %v179_v6  ;;  %411 = vmatmul.mubr.msk.f32.vlgmr.msra.gmra.mxu1 %vm190_vm0, %v181_v7 }
  0xd6   : > { %v409_v8 = vpop.f32.mrf.mxu0  ;;  %v412_v9 = vpop.f32.mrf.mxu1 }
  0xd7   : > { %305 = vst.msk [vmem:[%s168_s28 + $0x8] sm:$0xff] %vm303_vm1, %v409_v8  ;;  %307 = vst.msk [vmem:[%s168_s28 + $0x18] sm:$0xff] %vm303_vm1, %v412_v9 }
  0xd8   : > { %v269_v10 = vpop.f32.mrf.mxu0  ;;  %v279_v11 = vpop.f32.mrf.mxu1 }
  0xd9   : > { %304 = vst.msk [vmem:[%s168_s28] sm:$0xff] %vm303_vm1, %v269_v10  ;;  %306 = vst.msk [vmem:[%s168_s28 + $0x10] sm:$0xff] %vm303_vm1, %v279_v11 }
  0xda PF: > { %s12_s11 = sadd.s32 1, %s467_s11   ;;  %s532_s9 = smov %s463_s10 }
  0xdb   : > { %p9_p5 = scmp.ge.s32.totalorder %s12_s11, 4   ;;  %s533_s10 = smov %s535_s12 }
  0xdd   :  { %11 = sbr.rel (!%p9_p5) target bundleno = 2 (0x2), region = 66 }

</bundles_post_ra>
